<compile_context>
chip_gen: v7x
topology: tpu7x:2x2x1
jax: 0.10.0
libtpu: 0.0.40
codegen_flags: <defaults>
</compile_context>

<pallas_src>
import jax
import jax.numpy as jnp
from jax.experimental import pallas as pl
from jax.experimental.pallas import tpu as pltpu

EPS = 1e-5
IN_DIM = 128
H_DIM = 128
OUT_DIM = 17 * 3          # 51
OUT_PAD = 128             # lane-dense padded output width


def _cdiv(a, b):
    return -(-a // b)


def _round_up(x, m):
    return _cdiv(x, m) * m


def _layernorm(y, gamma, beta):
    # single-pass stats: var = E[y^2] - mean^2 (f32, activations are O(1))
    mean = jnp.mean(y, axis=-1, keepdims=True)
    var = jnp.mean(y * y, axis=-1, keepdims=True) - mean * mean
    return (y - mean) * jax.lax.rsqrt(var + EPS) * gamma + beta


def _decoder_kernel(x_ref, s1_ref, s0_ref,
                    w1m_ref,   # (128,256) bf16: [fc1 shortcut | fc1 long-path L1 (padded)]
                    wsq_ref,   # (4,128,128) bf16: [fc1 L2, fc1 L3, fc2 L2, fc2 L3]
                    w2m_ref,   # (256,256) bf16: [fc2 shortcut | fc2 long-path L1]
                    w3_ref,    # (256,128) bf16: fc3 (cols zero-padded 51->128)
                    b_ref,     # (16,128)  f32 : packed biases / gamma / beta
                    out_ref):
    f32 = jnp.float32
    bf16 = jnp.bfloat16

    def bias(i):
        return b_ref[i:i + 1, :]          # (1,128) f32, static row view

    x = x_ref[...].astype(bf16)
    s1 = s1_ref[...].astype(bf16)
    s0 = s0_ref[...].astype(bf16)

    # ---- fc1: residual_linear(128 -> 128); stage-1 merged along N ----
    y1 = jnp.dot(x, w1m_ref[...], preferred_element_type=f32)          # (TM,256)
    sc = jnp.maximum(y1[:, :H_DIM] + bias(0), 0.0)                     # shortcut
    h = jnp.maximum(y1[:, H_DIM:] + bias(1), 0.0)                      # long path L1 (padded)
    h = jnp.maximum(
        jnp.dot(h.astype(bf16), wsq_ref[0], preferred_element_type=f32) + bias(2), 0.0)
    lp = jnp.maximum(
        jnp.dot(h.astype(bf16), wsq_ref[1], preferred_element_type=f32) + bias(3), 0.0)
    d1 = _layernorm(sc + lp, bias(4), bias(5))

    # ---- fc2: residual_linear(256 -> 128); K=256 concat + N-merged stage-1 ----
    cat1 = jnp.concatenate([d1.astype(bf16), s1], axis=-1)             # (TM,256)
    y2 = jnp.dot(cat1, w2m_ref[...], preferred_element_type=f32)       # (TM,256)
    sc2 = jnp.maximum(y2[:, :H_DIM] + bias(6), 0.0)
    h2 = jnp.maximum(y2[:, H_DIM:] + bias(7), 0.0)
    h2 = jnp.maximum(
        jnp.dot(h2.astype(bf16), wsq_ref[2], preferred_element_type=f32) + bias(8), 0.0)
    lp2 = jnp.maximum(
        jnp.dot(h2.astype(bf16), wsq_ref[3], preferred_element_type=f32) + bias(9), 0.0)
    d2 = _layernorm(sc2 + lp2, bias(10), bias(11))

    # ---- fc3: Linear(256 -> 51, padded to 128); single K=256 dot ----
    cat2 = jnp.concatenate([d2.astype(bf16), s0], axis=-1)             # (TM,256)
    out_ref[...] = jnp.dot(cat2, w3_ref[...], preferred_element_type=f32) + bias(12)


def _const_spec(shape):
    nd = len(shape)
    return pl.BlockSpec(shape, lambda *i: (0,) * nd)


def _prep_weight_ops(params):
    """bf16 weights (merged / padded / stacked) + one packed f32 bias array."""
    f1, f2 = params["fc1"], params["fc2"]
    bf16 = jnp.bfloat16
    h1 = f1["w1"].shape[1]          # 64
    ph = H_DIM - h1                 # 64 (zero-pad of fc1's long-path hidden)

    # fc1 stage-1 merged along N: [shortcut(128) | long-path L1 padded to 128]
    w1m = jnp.concatenate(
        [f1["ws"], jnp.pad(f1["w1"], ((0, 0), (0, ph)))], axis=1).astype(bf16)  # (128,256)
    w1b = jnp.pad(f1["w2"], ((0, ph), (0, ph))).astype(bf16)                    # (128,128)
    w1c = jnp.pad(f1["w3"], ((0, ph), (0, 0))).astype(bf16)                     # (128,128)

    # fc2 stage-1 merged along N; K stays the full 256 (in-kernel cat feeds it)
    w2m = jnp.concatenate([f2["ws"], f2["w1"]], axis=1).astype(bf16)            # (256,256)
    w2b = f2["w2"].astype(bf16)                                                 # (128,128)
    w2c = f2["w3"].astype(bf16)                                                 # (128,128)

    wsq = jnp.stack([w1b, w1c, w2b, w2c], axis=0)                               # (4,128,128)

    # fc3 cols zero-padded 51 -> 128 so the final store is an unmasked lane-dense vst
    w3 = jnp.pad(params["fc3_w"],
                 ((0, 0), (0, OUT_PAD - OUT_DIM))).astype(bf16)                 # (256,128)

    # All 13 per-feature vectors packed into a single (16,128) f32 array.
    def row(v, pad=0):
        v = jnp.pad(v, (0, pad)) if pad else v
        return v.astype(jnp.float32)

    rows = [
        row(f1["bs"]), row(f1["b1"], ph), row(f1["b2"], ph), row(f1["b3"]),
        row(f1["g"]), row(f1["be"]),
        row(f2["bs"]), row(f2["b1"]), row(f2["b2"]), row(f2["b3"]),
        row(f2["g"]), row(f2["be"]),
        row(params["fc3_b"], OUT_PAD - OUT_DIM),
    ]
    rows += [jnp.zeros((H_DIM,), jnp.float32)] * (16 - len(rows))
    biases = jnp.stack(rows, axis=0)                                            # (16,128)

    return [w1m, wsq, w2m, w3, biases]


def decoder_forward(x, skip0, skip1, params):
    """x: (bs, 128), skip0/skip1: (bs, 128).  Returns (bs, 17, 3) float32."""
    M, in_dim = x.shape
    assert in_dim == IN_DIM

    # Balanced tiles: minimal row padding, >=2 grid steps when M > 8 (so both
    # v7x TensorCores get work), tile size capped near 512.
    ntiles = 1 if M <= 8 else max(2, _cdiv(M, 512))
    TM = _round_up(_cdiv(M, ntiles), 8)
    M_pad = _round_up(M, TM)

    def pad_m(a):
        a = a.astype(jnp.float32)
        return a if a.shape[0] == M_pad else jnp.pad(a, ((0, M_pad - M), (0, 0)))

    row_inputs = [pad_m(x), pad_m(skip1), pad_m(skip0)]
    weight_ops = _prep_weight_ops(params)

    in_specs = (
        [pl.BlockSpec((TM, IN_DIM), lambda i: (i, 0)),
         pl.BlockSpec((TM, H_DIM), lambda i: (i, 0)),
         pl.BlockSpec((TM, H_DIM), lambda i: (i, 0))]
        + [_const_spec(o.shape) for o in weight_ops]
    )

    out = pl.pallas_call(
        _decoder_kernel,
        out_shape=jax.ShapeDtypeStruct((M_pad, OUT_PAD), jnp.float32),
        grid=(M_pad // TM,),
        in_specs=in_specs,
        out_specs=pl.BlockSpec((TM, OUT_PAD), lambda i: (i, 0)),
        compiler_params=pltpu.CompilerParams(
            dimension_semantics=("parallel",),
            vmem_limit_bytes=32 * 1024 * 1024,
        ),
    )(*row_inputs, *weight_ops)

    # Padded rows / padded output columns sliced away; reshape to (bs, 17, 3).
    return out[:M, :OUT_DIM].reshape(M, 17, 3)


# ---------------- parameter construction + pure-JAX reference ----------------

def init_params(key, in_dim=IN_DIM, h_dim=H_DIM, out_dim=OUT_DIM):
    it = iter(jax.random.split(key, 64))

    def linear(nin, nout):
        bound = 1.0 / (nin ** 0.5)
        w = jax.random.uniform(next(it), (nin, nout), jnp.float32, -bound, bound)
        b = jax.random.uniform(next(it), (nout,), jnp.float32, -bound, bound)
        return w, b

    def res_block(nin, nout):
        h = nin // 2
        ws, bs = linear(nin, nout)
        w1, b1 = linear(nin, h)
        w2, b2 = linear(h, h)
        w3, b3 = linear(h, nout)
        g = 1.0 + 0.1 * jax.random.normal(next(it), (nout,), jnp.float32)
        be = 0.1 * jax.random.normal(next(it), (nout,), jnp.float32)
        return dict(ws=ws, bs=bs, w1=w1, b1=b1, w2=w2, b2=b2, w3=w3, b3=b3, g=g, be=be)

    fc1 = res_block(in_dim, h_dim)
    fc2 = res_block(2 * h_dim, h_dim)
    fc3_w, fc3_b = linear(2 * h_dim, out_dim)
    return dict(fc1=fc1, fc2=fc2, fc3_w=fc3_w, fc3_b=fc3_b)


def _reference(x, skip0, skip1, p):
    hi = jax.lax.Precision.HIGHEST

    def relu(v):
        return jnp.maximum(v, 0.0)

    def lin(v, w, b):
        return jnp.dot(v, w, precision=hi) + b

    def ln(v, g, b):
        m = v.mean(-1, keepdims=True)
        var = ((v - m) ** 2).mean(-1, keepdims=True)
        return (v - m) / jnp.sqrt(var + EPS) * g + b

    def res(v, q):
        sc = relu(lin(v, q["ws"], q["bs"]))
        h = relu(lin(v, q["w1"], q["b1"]))
        h = relu(lin(h, q["w2"], q["b2"]))
        lp = relu(lin(h, q["w3"], q["b3"]))
        return ln(sc + lp, q["g"], q["be"])

    d1 = res(x, p["fc1"])
    d2 = res(jnp.concatenate([d1, skip1], axis=1), p["fc2"])
    out = lin(jnp.concatenate([d2, skip0], axis=1), p["fc3_w"], p["fc3_b"])
    return out.reshape(x.shape[0], 17, 3)


if __name__ == "__main__":
    key = jax.random.PRNGKey(0)
    kp, kx, ks0, ks1 = jax.random.split(key, 4)
    params = init_params(kp)

    bs = 2
    x = jax.random.normal(kx, (bs, IN_DIM), dtype=jnp.float32)
    skip0 = jax.random.normal(ks0, (bs, H_DIM), dtype=jnp.float32)
    skip1 = jax.random.normal(ks1, (bs, H_DIM), dtype=jnp.float32)

    out = decoder_forward(x, skip0, skip1, params)
    out = jax.block_until_ready(out)

    ref = _reference(x, skip0, skip1, params)
    assert out.shape == (bs, 17, 3), out.shape
    max_err = float(jnp.abs(out - ref).max())
    # bf16 weight/operand storage (per perf review) == MXU-native bf16-mul /
    # f32-accumulate numerics; reference uses fp32 HIGHEST, so allow a few e-3.
    assert jnp.allclose(out, ref, rtol=5e-3, atol=5e-3), max_err

    print("KERNEL_OK")
</pallas_src>

<mosaic_0001>
module attributes {stable_mosaic.version = 11 : i64} {
  func.func @_decoder_kernel(%arg0: i32, %arg1: memref<8x128xf32, #tpu.memory_space<vmem>>, %arg2: memref<8x128xf32, #tpu.memory_space<vmem>>, %arg3: memref<8x128xf32, #tpu.memory_space<vmem>>, %arg4: memref<128x256xbf16, #tpu.memory_space<vmem>>, %arg5: memref<4x128x128xbf16, #tpu.memory_space<vmem>>, %arg6: memref<256x256xbf16, #tpu.memory_space<vmem>>, %arg7: memref<256x128xbf16, #tpu.memory_space<vmem>>, %arg8: memref<16x128xf32, #tpu.memory_space<vmem>>, %arg9: memref<8x128xf32, #tpu.memory_space<vmem>>) attributes {dimension_semantics = [#tpu.dimension_semantics<parallel>], iteration_bounds = array<i64: 1>, scalar_prefetch = 0 : i64, scratch_operands = 0 : i64, tpu.core_type = #tpu.core_type<tc>, window_params = [{transform_indices = @transform_0, window_bounds = array<i64: 8, 128>}, {transform_indices = @transform_1, window_bounds = array<i64: 8, 128>}, {transform_indices = @transform_2, window_bounds = array<i64: 8, 128>}, {pipeline_mode = #tpu.pipeline_mode<synchronous>, transform_indices = @transform_3, window_bounds = array<i64: 128, 256>}, {pipeline_mode = #tpu.pipeline_mode<synchronous>, transform_indices = @transform_4, window_bounds = array<i64: 4, 128, 128>}, {pipeline_mode = #tpu.pipeline_mode<synchronous>, transform_indices = @transform_5, window_bounds = array<i64: 256, 256>}, {pipeline_mode = #tpu.pipeline_mode<synchronous>, transform_indices = @transform_6, window_bounds = array<i64: 256, 128>}, {pipeline_mode = #tpu.pipeline_mode<synchronous>, transform_indices = @transform_7, window_bounds = array<i64: 16, 128>}, {transform_indices = @transform_8, window_bounds = array<i64: 8, 128>}]} {
    %c0 = arith.constant 0 : index
    %c0_0 = arith.constant 0 : index
    %0 = vector.load %arg1[%c0, %c0_0] : memref<8x128xf32, #tpu.memory_space<vmem>>, vector<8x128xf32>
    %1 = arith.truncf %0 : vector<8x128xf32> to vector<8x128xbf16>
    %c0_1 = arith.constant 0 : index
    %c0_2 = arith.constant 0 : index
    %2 = vector.load %arg2[%c0_1, %c0_2] : memref<8x128xf32, #tpu.memory_space<vmem>>, vector<8x128xf32>
    %3 = arith.truncf %2 : vector<8x128xf32> to vector<8x128xbf16>
    %c0_3 = arith.constant 0 : index
    %c0_4 = arith.constant 0 : index
    %4 = vector.load %arg3[%c0_3, %c0_4] : memref<8x128xf32, #tpu.memory_space<vmem>>, vector<8x128xf32>
    %5 = arith.truncf %4 : vector<8x128xf32> to vector<8x128xbf16>
    %c0_5 = arith.constant 0 : index
    %c0_6 = arith.constant 0 : index
    %6 = vector.load %arg4[%c0_5, %c0_6] : memref<128x256xbf16, #tpu.memory_space<vmem>>, vector<128x256xbf16>
    %cst = arith.constant dense<0.000000e+00> : vector<8x256xf32>
    %7 = tpu.matmul %1, %6, %cst {dimension_numbers = #tpu.dot_dimension_numbers<[1], [0], [0], [1], [0, 0, 1, 1], [], []>} : vector<8x128xbf16>, vector<128x256xbf16>, vector<8x256xf32> -> vector<8x256xf32>
    %8 = vector.extract_strided_slice %7 {offsets = [0, 0], sizes = [8, 128], strides = [1, 1]} : vector<8x256xf32> to vector<8x128xf32>
    %c0_7 = arith.constant 0 : index
    %c0_8 = arith.constant 0 : index
    %9 = vector.load %arg8[%c0_7, %c0_8] : memref<16x128xf32, #tpu.memory_space<vmem>>, vector<1x128xf32>
    %10 = vector.broadcast %9 : vector<1x128xf32> to vector<8x128xf32>
    %11 = arith.addf %8, %10 : vector<8x128xf32>
    %cst_9 = arith.constant 0.000000e+00 : f32
    %12 = vector.broadcast %cst_9 : f32 to vector<8x128xf32>
    %13 = arith.maximumf %11, %12 : vector<8x128xf32>
    %14 = vector.extract_strided_slice %7 {offsets = [0, 128], sizes = [8, 128], strides = [1, 1]} : vector<8x256xf32> to vector<8x128xf32>
    %c1 = arith.constant 1 : index
    %c0_10 = arith.constant 0 : index
    %15 = vector.load %arg8[%c1, %c0_10] : memref<16x128xf32, #tpu.memory_space<vmem>>, vector<1x128xf32>
    %16 = vector.broadcast %15 : vector<1x128xf32> to vector<8x128xf32>
    %17 = arith.addf %14, %16 : vector<8x128xf32>
    %cst_11 = arith.constant 0.000000e+00 : f32
    %18 = vector.broadcast %cst_11 : f32 to vector<8x128xf32>
    %19 = arith.maximumf %17, %18 : vector<8x128xf32>
    %20 = arith.truncf %19 : vector<8x128xf32> to vector<8x128xbf16>
    %c0_12 = arith.constant 0 : index
    %c0_13 = arith.constant 0 : index
    %c0_14 = arith.constant 0 : index
    %21 = vector.load %arg5[%c0_12, %c0_13, %c0_14] : memref<4x128x128xbf16, #tpu.memory_space<vmem>>, vector<1x128x128xbf16>
    %22 = vector.shape_cast %21 : vector<1x128x128xbf16> to vector<128x128xbf16>
    %cst_15 = arith.constant dense<0.000000e+00> : vector<8x128xf32>
    %23 = tpu.matmul %20, %22, %cst_15 {dimension_numbers = #tpu.dot_dimension_numbers<[1], [0], [0], [1], [0, 0, 1, 1], [], []>} : vector<8x128xbf16>, vector<128x128xbf16>, vector<8x128xf32> -> vector<8x128xf32>
    %c2 = arith.constant 2 : index
    %c0_16 = arith.constant 0 : index
    %24 = vector.load %arg8[%c2, %c0_16] : memref<16x128xf32, #tpu.memory_space<vmem>>, vector<1x128xf32>
    %25 = vector.broadcast %24 : vector<1x128xf32> to vector<8x128xf32>
    %26 = arith.addf %23, %25 : vector<8x128xf32>
    %cst_17 = arith.constant 0.000000e+00 : f32
    %27 = vector.broadcast %cst_17 : f32 to vector<8x128xf32>
    %28 = arith.maximumf %26, %27 : vector<8x128xf32>
    %29 = arith.truncf %28 : vector<8x128xf32> to vector<8x128xbf16>
    %c1_18 = arith.constant 1 : index
    %c0_19 = arith.constant 0 : index
    %c0_20 = arith.constant 0 : index
    %30 = vector.load %arg5[%c1_18, %c0_19, %c0_20] : memref<4x128x128xbf16, #tpu.memory_space<vmem>>, vector<1x128x128xbf16>
    %31 = vector.shape_cast %30 : vector<1x128x128xbf16> to vector<128x128xbf16>
    %cst_21 = arith.constant dense<0.000000e+00> : vector<8x128xf32>
    %32 = tpu.matmul %29, %31, %cst_21 {dimension_numbers = #tpu.dot_dimension_numbers<[1], [0], [0], [1], [0, 0, 1, 1], [], []>} : vector<8x128xbf16>, vector<128x128xbf16>, vector<8x128xf32> -> vector<8x128xf32>
    %c3 = arith.constant 3 : index
    %c0_22 = arith.constant 0 : index
    %33 = vector.load %arg8[%c3, %c0_22] : memref<16x128xf32, #tpu.memory_space<vmem>>, vector<1x128xf32>
    %34 = vector.broadcast %33 : vector<1x128xf32> to vector<8x128xf32>
    %35 = arith.addf %32, %34 : vector<8x128xf32>
    %cst_23 = arith.constant 0.000000e+00 : f32
    %36 = vector.broadcast %cst_23 : f32 to vector<8x128xf32>
    %37 = arith.maximumf %35, %36 : vector<8x128xf32>
    %38 = arith.addf %13, %37 : vector<8x128xf32>
    %c4 = arith.constant 4 : index
    %c0_24 = arith.constant 0 : index
    %39 = vector.load %arg8[%c4, %c0_24] : memref<16x128xf32, #tpu.memory_space<vmem>>, vector<1x128xf32>
    %c5 = arith.constant 5 : index
    %c0_25 = arith.constant 0 : index
    %40 = vector.load %arg8[%c5, %c0_25] : memref<16x128xf32, #tpu.memory_space<vmem>>, vector<1x128xf32>
    %cst_26 = arith.constant dense<0.000000e+00> : vector<8xf32>
    %41 = vector.multi_reduction <add>, %38, %cst_26 [1] : vector<8x128xf32> to vector<8xf32>
    %42 = vector.shape_cast %41 : vector<8xf32> to vector<8x1xf32>
    %cst_27 = arith.constant 1.280000e+02 : f32
    %43 = vector.broadcast %cst_27 : f32 to vector<8x1xf32>
    %44 = arith.divf %42, %43 : vector<8x1xf32>
    %45 = arith.mulf %38, %38 : vector<8x128xf32>
    %cst_28 = arith.constant dense<0.000000e+00> : vector<8xf32>
    %46 = vector.multi_reduction <add>, %45, %cst_28 [1] : vector<8x128xf32> to vector<8xf32>
    %47 = vector.shape_cast %46 : vector<8xf32> to vector<8x1xf32>
    %cst_29 = arith.constant 1.280000e+02 : f32
    %48 = vector.broadcast %cst_29 : f32 to vector<8x1xf32>
    %49 = arith.divf %47, %48 : vector<8x1xf32>
    %50 = arith.mulf %44, %44 : vector<8x1xf32>
    %51 = arith.subf %49, %50 : vector<8x1xf32>
    %52 = vector.broadcast %44 : vector<8x1xf32> to vector<8x128xf32>
    %53 = arith.subf %38, %52 : vector<8x128xf32>
    %cst_30 = arith.constant 9.99999974E-6 : f32
    %54 = vector.broadcast %cst_30 : f32 to vector<8x1xf32>
    %55 = arith.addf %51, %54 : vector<8x1xf32>
    %56 = math.rsqrt %55 : vector<8x1xf32>
    %57 = vector.broadcast %56 : vector<8x1xf32> to vector<8x128xf32>
    %58 = arith.mulf %53, %57 : vector<8x128xf32>
    %59 = vector.broadcast %39 : vector<1x128xf32> to vector<8x128xf32>
    %60 = arith.mulf %58, %59 : vector<8x128xf32>
    %61 = vector.broadcast %40 : vector<1x128xf32> to vector<8x128xf32>
    %62 = arith.addf %60, %61 : vector<8x128xf32>
    %63 = arith.truncf %62 : vector<8x128xf32> to vector<8x128xbf16>
    %64 = tpu.concatenate %63, %3 in 1 : vector<8x128xbf16>, vector<8x128xbf16> -> vector<8x256xbf16>
    %c0_31 = arith.constant 0 : index
    %c0_32 = arith.constant 0 : index
    %65 = vector.load %arg6[%c0_31, %c0_32] : memref<256x256xbf16, #tpu.memory_space<vmem>>, vector<256x256xbf16>
    %cst_33 = arith.constant dense<0.000000e+00> : vector<8x256xf32>
    %66 = tpu.matmul %64, %65, %cst_33 {dimension_numbers = #tpu.dot_dimension_numbers<[1], [0], [0], [1], [0, 0, 1, 1], [], []>} : vector<8x256xbf16>, vector<256x256xbf16>, vector<8x256xf32> -> vector<8x256xf32>
    %67 = vector.extract_strided_slice %66 {offsets = [0, 0], sizes = [8, 128], strides = [1, 1]} : vector<8x256xf32> to vector<8x128xf32>
    %c6 = arith.constant 6 : index
    %c0_34 = arith.constant 0 : index
    %68 = vector.load %arg8[%c6, %c0_34] : memref<16x128xf32, #tpu.memory_space<vmem>>, vector<1x128xf32>
    %69 = vector.broadcast %68 : vector<1x128xf32> to vector<8x128xf32>
    %70 = arith.addf %67, %69 : vector<8x128xf32>
    %cst_35 = arith.constant 0.000000e+00 : f32
    %71 = vector.broadcast %cst_35 : f32 to vector<8x128xf32>
    %72 = arith.maximumf %70, %71 : vector<8x128xf32>
    %73 = vector.extract_strided_slice %66 {offsets = [0, 128], sizes = [8, 128], strides = [1, 1]} : vector<8x256xf32> to vector<8x128xf32>
    %c7 = arith.constant 7 : index
    %c0_36 = arith.constant 0 : index
    %74 = vector.load %arg8[%c7, %c0_36] : memref<16x128xf32, #tpu.memory_space<vmem>>, vector<1x128xf32>
    %75 = vector.broadcast %74 : vector<1x128xf32> to vector<8x128xf32>
    %76 = arith.addf %73, %75 : vector<8x128xf32>
    %cst_37 = arith.constant 0.000000e+00 : f32
    %77 = vector.broadcast %cst_37 : f32 to vector<8x128xf32>
    %78 = arith.maximumf %76, %77 : vector<8x128xf32>
    %79 = arith.truncf %78 : vector<8x128xf32> to vector<8x128xbf16>
    %c2_38 = arith.constant 2 : index
    %c0_39 = arith.constant 0 : index
    %c0_40 = arith.constant 0 : index
    %80 = vector.load %arg5[%c2_38, %c0_39, %c0_40] : memref<4x128x128xbf16, #tpu.memory_space<vmem>>, vector<1x128x128xbf16>
    %81 = vector.shape_cast %80 : vector<1x128x128xbf16> to vector<128x128xbf16>
    %cst_41 = arith.constant dense<0.000000e+00> : vector<8x128xf32>
    %82 = tpu.matmul %79, %81, %cst_41 {dimension_numbers = #tpu.dot_dimension_numbers<[1], [0], [0], [1], [0, 0, 1, 1], [], []>} : vector<8x128xbf16>, vector<128x128xbf16>, vector<8x128xf32> -> vector<8x128xf32>
    %c8 = arith.constant 8 : index
    %c0_42 = arith.constant 0 : index
    %83 = vector.load %arg8[%c8, %c0_42] : memref<16x128xf32, #tpu.memory_space<vmem>>, vector<1x128xf32>
    %84 = vector.broadcast %83 : vector<1x128xf32> to vector<8x128xf32>
    %85 = arith.addf %82, %84 : vector<8x128xf32>
    %cst_43 = arith.constant 0.000000e+00 : f32
    %86 = vector.broadcast %cst_43 : f32 to vector<8x128xf32>
    %87 = arith.maximumf %85, %86 : vector<8x128xf32>
    %88 = arith.truncf %87 : vector<8x128xf32> to vector<8x128xbf16>
    %c3_44 = arith.constant 3 : index
    %c0_45 = arith.constant 0 : index
    %c0_46 = arith.constant 0 : index
    %89 = vector.load %arg5[%c3_44, %c0_45, %c0_46] : memref<4x128x128xbf16, #tpu.memory_space<vmem>>, vector<1x128x128xbf16>
    %90 = vector.shape_cast %89 : vector<1x128x128xbf16> to vector<128x128xbf16>
    %cst_47 = arith.constant dense<0.000000e+00> : vector<8x128xf32>
    %91 = tpu.matmul %88, %90, %cst_47 {dimension_numbers = #tpu.dot_dimension_numbers<[1], [0], [0], [1], [0, 0, 1, 1], [], []>} : vector<8x128xbf16>, vector<128x128xbf16>, vector<8x128xf32> -> vector<8x128xf32>
    %c9 = arith.constant 9 : index
    %c0_48 = arith.constant 0 : index
    %92 = vector.load %arg8[%c9, %c0_48] : memref<16x128xf32, #tpu.memory_space<vmem>>, vector<1x128xf32>
    %93 = vector.broadcast %92 : vector<1x128xf32> to vector<8x128xf32>
    %94 = arith.addf %91, %93 : vector<8x128xf32>
    %cst_49 = arith.constant 0.000000e+00 : f32
    %95 = vector.broadcast %cst_49 : f32 to vector<8x128xf32>
    %96 = arith.maximumf %94, %95 : vector<8x128xf32>
    %97 = arith.addf %72, %96 : vector<8x128xf32>
    %c10 = arith.constant 10 : index
    %c0_50 = arith.constant 0 : index
    %98 = vector.load %arg8[%c10, %c0_50] : memref<16x128xf32, #tpu.memory_space<vmem>>, vector<1x128xf32>
    %c11 = arith.constant 11 : index
    %c0_51 = arith.constant 0 : index
    %99 = vector.load %arg8[%c11, %c0_51] : memref<16x128xf32, #tpu.memory_space<vmem>>, vector<1x128xf32>
    %cst_52 = arith.constant dense<0.000000e+00> : vector<8xf32>
    %100 = vector.multi_reduction <add>, %97, %cst_52 [1] : vector<8x128xf32> to vector<8xf32>
    %101 = vector.shape_cast %100 : vector<8xf32> to vector<8x1xf32>
    %cst_53 = arith.constant 1.280000e+02 : f32
    %102 = vector.broadcast %cst_53 : f32 to vector<8x1xf32>
    %103 = arith.divf %101, %102 : vector<8x1xf32>
    %104 = arith.mulf %97, %97 : vector<8x128xf32>
    %cst_54 = arith.constant dense<0.000000e+00> : vector<8xf32>
    %105 = vector.multi_reduction <add>, %104, %cst_54 [1] : vector<8x128xf32> to vector<8xf32>
    %106 = vector.shape_cast %105 : vector<8xf32> to vector<8x1xf32>
    %cst_55 = arith.constant 1.280000e+02 : f32
    %107 = vector.broadcast %cst_55 : f32 to vector<8x1xf32>
    %108 = arith.divf %106, %107 : vector<8x1xf32>
    %109 = arith.mulf %103, %103 : vector<8x1xf32>
    %110 = arith.subf %108, %109 : vector<8x1xf32>
    %111 = vector.broadcast %103 : vector<8x1xf32> to vector<8x128xf32>
    %112 = arith.subf %97, %111 : vector<8x128xf32>
    %cst_56 = arith.constant 9.99999974E-6 : f32
    %113 = vector.broadcast %cst_56 : f32 to vector<8x1xf32>
    %114 = arith.addf %110, %113 : vector<8x1xf32>
    %115 = math.rsqrt %114 : vector<8x1xf32>
    %116 = vector.broadcast %115 : vector<8x1xf32> to vector<8x128xf32>
    %117 = arith.mulf %112, %116 : vector<8x128xf32>
    %118 = vector.broadcast %98 : vector<1x128xf32> to vector<8x128xf32>
    %119 = arith.mulf %117, %118 : vector<8x128xf32>
    %120 = vector.broadcast %99 : vector<1x128xf32> to vector<8x128xf32>
    %121 = arith.addf %119, %120 : vector<8x128xf32>
    %122 = arith.truncf %121 : vector<8x128xf32> to vector<8x128xbf16>
    %123 = tpu.concatenate %122, %5 in 1 : vector<8x128xbf16>, vector<8x128xbf16> -> vector<8x256xbf16>
    %c0_57 = arith.constant 0 : index
    %c0_58 = arith.constant 0 : index
    %124 = vector.load %arg7[%c0_57, %c0_58] : memref<256x128xbf16, #tpu.memory_space<vmem>>, vector<256x128xbf16>
    %cst_59 = arith.constant dense<0.000000e+00> : vector<8x128xf32>
    %125 = tpu.matmul %123, %124, %cst_59 {dimension_numbers = #tpu.dot_dimension_numbers<[1], [0], [0], [1], [0, 0, 1, 1], [], []>} : vector<8x256xbf16>, vector<256x128xbf16>, vector<8x128xf32> -> vector<8x128xf32>
    %c12 = arith.constant 12 : index
    %c0_60 = arith.constant 0 : index
    %126 = vector.load %arg8[%c12, %c0_60] : memref<16x128xf32, #tpu.memory_space<vmem>>, vector<1x128xf32>
    %127 = vector.broadcast %126 : vector<1x128xf32> to vector<8x128xf32>
    %128 = arith.addf %125, %127 : vector<8x128xf32>
    %c0_61 = arith.constant 0 : index
    %c0_62 = arith.constant 0 : index
    %129 = vector.load %arg9[%c0_61, %c0_62] : memref<8x128xf32, #tpu.memory_space<vmem>>, vector<8x128xf32>
    tpu.vector_store %arg9[%c0_61, %c0_62], %128 {strides = array<i32>} : memref<8x128xf32, #tpu.memory_space<vmem>>, vector<8x128xf32>,
    return
  }
  func.func @transform_0(%arg0: i32) -> (i32, i32) {
    %c0_i32 = arith.constant 0 : i32
    %c0_i32_0 = arith.constant 0 : i32
    return %arg0, %c0_i32 : i32, i32
  }
  func.func @transform_1(%arg0: i32) -> (i32, i32) {
    %c0_i32 = arith.constant 0 : i32
    %c0_i32_0 = arith.constant 0 : i32
    return %arg0, %c0_i32 : i32, i32
  }
  func.func @transform_2(%arg0: i32) -> (i32, i32) {
    %c0_i32 = arith.constant 0 : i32
    %c0_i32_0 = arith.constant 0 : i32
    return %arg0, %c0_i32 : i32, i32
  }
  func.func @transform_3(%arg0: i32) -> (i32, i32) {
    %c0_i32 = arith.constant 0 : i32
    %c0_i32_0 = arith.constant 0 : i32
    %c0_i32_1 = arith.constant 0 : i32
    return %c0_i32, %c0_i32_0 : i32, i32
  }
  func.func @transform_4(%arg0: i32) -> (i32, i32, i32) {
    %c0_i32 = arith.constant 0 : i32
    %c0_i32_0 = arith.constant 0 : i32
    %c0_i32_1 = arith.constant 0 : i32
    %c0_i32_2 = arith.constant 0 : i32
    return %c0_i32, %c0_i32_0, %c0_i32_1 : i32, i32, i32
  }
  func.func @transform_5(%arg0: i32) -> (i32, i32) {
    %c0_i32 = arith.constant 0 : i32
    %c0_i32_0 = arith.constant 0 : i32
    %c0_i32_1 = arith.constant 0 : i32
    return %c0_i32, %c0_i32_0 : i32, i32
  }
  func.func @transform_6(%arg0: i32) -> (i32, i32) {
    %c0_i32 = arith.constant 0 : i32
    %c0_i32_0 = arith.constant 0 : i32
    %c0_i32_1 = arith.constant 0 : i32
    return %c0_i32, %c0_i32_0 : i32, i32
  }
  func.func @transform_7(%arg0: i32) -> (i32, i32) {
    %c0_i32 = arith.constant 0 : i32
    %c0_i32_0 = arith.constant 0 : i32
    %c0_i32_1 = arith.constant 0 : i32
    return %c0_i32, %c0_i32_0 : i32, i32
  }
  func.func @transform_8(%arg0: i32) -> (i32, i32) {
    %c0_i32 = arith.constant 0 : i32
    %c0_i32_0 = arith.constant 0 : i32
    return %arg0, %c0_i32 : i32, i32
  }
}

</mosaic_0001>

<bundles_post_ra>
// kernel: tpu_custom_call.1
= control target key start
LH: loop header
LB: loop body
LE: loop exit
PB: predicated region body
PF: predicated region fallthrough
CT: control target
= control target key end

     0   :  { %13 = vsyncpa [#allocation3], 0  ;;  %s2045_s0 = inlined_call_operand.hbm [shape: f32[8,128], index: 0, kind: input, shape index: {}]   ;;  %s2046_s1 = inlined_call_operand.hbm [shape: f32[8,128], index: 1, kind: input, shape index: {}]   ;;  %s2047_s2 = inlined_call_operand.hbm [shape: f32[8,128], index: 2, kind: input, shape index: {}]   ;;  %s2048_s3 = inlined_call_operand.hbm [shape: bf16[128,256], index: 3, kind: input, shape index: {}]   ;;  %s2049_s4 = inlined_call_operand.hbm [shape: bf16[4,128,128], index: 4, kind: input, shape index: {}]   ;;  %s2050_s5 = inlined_call_operand.hbm [shape: bf16[256,256], index: 5, kind: input, shape index: {}]   ;;  %s2051_s6 = inlined_call_operand.hbm [shape: bf16[256,128], index: 6, kind: input, shape index: {}]   ;;  %s2052_s7 = inlined_call_operand.vmem [shape: f32[16,128], index: 7, kind: input, shape index: {}]   ;;  %s2053_s8 = inlined_call_operand.hbm [shape: f32[8,128], index: 8, kind: output, shape index: {}]  }
   0x1   :  { %14 = vsyncpa [#allocation6], 0 }
   0x2   :  { %15 = vsyncpa [#allocation9], 0 }
   0x3   :  { %16 = vsyncpa [#allocation12], 0 }
   0x4   :  { %17 = vsyncpa [#allocation4], 0  ;;  %s1790_s27 = smov [#allocation5]   ;;  %s1791_s29 = smov [#allocation8]  }
   0x5   :  { %s34_s28 = sshll.u32 %s1790_s27, 4  ;;  %s53_s30 = sshll.u32 %s1791_s29, 4  ;;  %s35_s28 = int_to_ptr.vmem [resolvable:$true] %s34_s28  ;;  %s1850_s30 = int_to_ptr.vmem [resolvable:$true] %s53_s30 }
   0x6   :  { %s1604_s11 = scalar_lea.hbm %s2046_s1, 128 }
   0x7   :  { %p1605_p0 = scmp.ne.s32.totalorder %s2046_s1, %s1604_s11  ;;  %p1608_p1 = scmp.lt.u32.totalorder %s1604_s11, %s2046_s1 }
   0x9   :  { %p1610_p2 = pnand %p1608_p1, %p1605_p0 }
   0xb   :  { %1613 = shalt.err (!%p1610_p2)
}
   0xc   :  { %s1614_s16 = scalar_lea.vmem %s35_s28, 128  ;;  %p1619_p4 = scmp.lt.s32.totalorder %s35_s28, %s35_s28 }
   0xd   :  { %p1615_p3 = scmp.ne.s32.totalorder %s35_s28, %s1614_s16  ;;  %p1620_p5 = scmp.lt.s32.totalorder %s1614_s16, %s1614_s16 }
   0xf   :  { %p1621_p6 = por %p1620_p5, %p1619_p4 }
  0x11   :  { %p1622_p7 = pnand %p1621_p6, %p1615_p3 }
  0x13   :  { %1625 = shalt.err (!%p1622_p7)
}
  0x14   :  { %37 = dma.hbm_to_vmem [thread:$0]  %s2046_s1, 128, %s35_s28, [#allocation6]  }
  0x15   :  { %s1626_s21 = scalar_lea.hbm %s2048_s3, 2048 }
  0x16   :  { %p1627_p8 = scmp.ne.s32.totalorder %s2048_s3, %s1626_s21  ;;  %p1630_p9 = scmp.lt.u32.totalorder %s1626_s21, %s2048_s3 }
  0x18   :  { %p1632_p10 = pnand %p1630_p9, %p1627_p8 }
  0x1a   :  { %1635 = shalt.err (!%p1632_p10)
}
  0x1b   :  { %s1636_s26 = scalar_lea.vmem %s1850_s30, 2048  ;;  %p1641_p12 = scmp.lt.s32.totalorder %s1850_s30, %s1850_s30 }
  0x1c   :  { %p1637_p11 = scmp.ne.s32.totalorder %s1850_s30, %s1636_s26  ;;  %p1642_p13 = scmp.lt.s32.totalorder %s1636_s26, %s1636_s26 }
  0x1e   :  { %p1643_p0 = por %p1642_p13, %p1641_p12 }
  0x20   :  { %p1644_p1 = pnand %p1643_p0, %p1637_p11 }
  0x22   :  { %1647 = shalt.err (!%p1644_p1)
}
  0x23   :  { %s1792_s1 = smov 128   ;;  %s1793_s27 = smov 8  }
  0x24   :  { %59 = dma.hbm_to_vmem [thread:$0]  %s2048_s3, 2048, %s1850_s30, [#allocation9], %s1792_s1, %s1792_s1, %s1793_s27  }
  0x25   :  { %s1794_s9 = smov [#allocation11]   ;;  %s1795_s11 = smov [#allocation2]  }
  0x26   :  { %s77_s10 = sshll.u32 %s1794_s9, 4  ;;  %s24_s12 = sshll.u32 %s1795_s11, 4  ;;  %s78_s10 = int_to_ptr.vmem [resolvable:$true] %s77_s10  ;;  %s25_s12 = int_to_ptr.vmem [resolvable:$true] %s24_s12 }
  0x27   :  { %s1648_s15 = scalar_lea.hbm %s2050_s5, 4096 }
  0x28   :  { %p1649_p2 = scmp.ne.s32.totalorder %s2050_s5, %s1648_s15  ;;  %p1652_p3 = scmp.lt.u32.totalorder %s1648_s15, %s2050_s5 }
  0x2a   :  { %p1654_p4 = pnand %p1652_p3, %p1649_p2 }
  0x2c   :  { %1657 = shalt.err (!%p1654_p4)
}
  0x2d   :  { %s1658_s3 = scalar_lea.vmem %s78_s10, 4096  ;;  %p1663_p6 = scmp.lt.s32.totalorder %s78_s10, %s78_s10 }
  0x2e   :  { %p1659_p5 = scmp.ne.s32.totalorder %s78_s10, %s1658_s3  ;;  %p1664_p7 = scmp.lt.s32.totalorder %s1658_s3, %s1658_s3 }
  0x30   :  { %p1665_p8 = por %p1664_p7, %p1663_p6 }
  0x32   :  { %p1666_p9 = pnand %p1665_p8, %p1659_p5 }
  0x34   :  { %1669 = shalt.err (!%p1666_p9)
}
  0x35   :  { %83 = dma.hbm_to_vmem [thread:$0]  %s2050_s5, 4096, %s78_s10, [#allocation12], %s1792_s1, %s1792_s1, %s1793_s27  }
  0x36   :  { %s1670_s23 = scalar_lea.hbm %s2045_s0, 128 }
  0x37   :  { %p1671_p10 = scmp.ne.s32.totalorder %s2045_s0, %s1670_s23  ;;  %p1674_p11 = scmp.lt.u32.totalorder %s1670_s23, %s2045_s0 }
  0x39   :  { %p1676_p12 = pnand %p1674_p11, %p1671_p10 }
  0x3b   :  { %1679 = shalt.err (!%p1676_p12)
}
  0x3c   :  { %s1680_s29 = scalar_lea.vmem %s25_s12, 128  ;;  %p1685_p0 = scmp.lt.s32.totalorder %s25_s12, %s25_s12 }
  0x3d   :  { %p1681_p13 = scmp.ne.s32.totalorder %s25_s12, %s1680_s29  ;;  %p1686_p1 = scmp.lt.s32.totalorder %s1680_s29, %s1680_s29 }
  0x3f   :  { %p1687_p2 = por %p1686_p1, %p1685_p0 }
  0x41   :  { %p1688_p3 = pnand %p1687_p2, %p1681_p13 }
  0x43   :  { %1691 = shalt.err (!%p1688_p3)
}
  0x44   :  { %27 = dma.hbm_to_vmem [thread:$0]  %s2045_s0, 128, %s25_s12, [#allocation3]  }
  0x45   :  { %s1796_s27 = smov [#allocation7]   ;;  %s1797_s10 = smov [#allocation10]  }
  0x46   :  { %s44_s9 = sshll.u32 %s1796_s27, 4  ;;  %s65_s11 = sshll.u32 %s1797_s10, 4  ;;  %s45_s9 = int_to_ptr.vmem [resolvable:$true] %s44_s9  ;;  %s1905_s11 = int_to_ptr.vmem [resolvable:$true] %s65_s11 }
  0x47   :  { %s1692_s15 = scalar_lea.hbm %s2047_s2, 128 }
  0x48   :  { %p1693_p4 = scmp.ne.s32.totalorder %s2047_s2, %s1692_s15  ;;  %p1696_p5 = scmp.lt.u32.totalorder %s1692_s15, %s2047_s2 }
  0x4a   :  { %p1698_p6 = pnand %p1696_p5, %p1693_p4 }
  0x4c   :  { %1701 = shalt.err (!%p1698_p6)
}
  0x4d   :  { %s1702_s0 = scalar_lea.vmem %s45_s9, 128  ;;  %p1707_p8 = scmp.lt.s32.totalorder %s45_s9, %s45_s9 }
  0x4e   :  { %p1703_p7 = scmp.ne.s32.totalorder %s45_s9, %s1702_s0  ;;  %p1708_p9 = scmp.lt.s32.totalorder %s1702_s0, %s1702_s0 }
  0x50   :  { %p1709_p10 = por %p1708_p9, %p1707_p8 }
  0x52   :  { %p1710_p11 = pnand %p1709_p10, %p1703_p7 }
  0x54   :  { %1713 = shalt.err (!%p1710_p11)
}
  0x55   :  { %47 = dma.hbm_to_vmem [thread:$0]  %s2047_s2, 128, %s45_s9, [#allocation6]  }
  0x56   :  { %s1714_s21 = scalar_lea.hbm %s2049_s4, 4096 }
  0x57   :  { %p1715_p12 = scmp.ne.s32.totalorder %s2049_s4, %s1714_s21  ;;  %p1718_p13 = scmp.lt.u32.totalorder %s1714_s21, %s2049_s4 }
  0x59   :  { %p1720_p0 = pnand %p1718_p13, %p1715_p12 }
  0x5b   :  { %1723 = shalt.err (!%p1720_p0)
}
  0x5c   :  { %s1724_s26 = scalar_lea.vmem %s1905_s11, 4096  ;;  %p1729_p2 = scmp.lt.s32.totalorder %s1905_s11, %s1905_s11 }
  0x5d   :  { %p1725_p1 = scmp.ne.s32.totalorder %s1905_s11, %s1724_s26  ;;  %p1730_p3 = scmp.lt.s32.totalorder %s1724_s26, %s1724_s26 }
  0x5f   :  { %p1731_p4 = por %p1730_p3, %p1729_p2 }
  0x61   :  { %p1732_p5 = pnand %p1731_p4, %p1725_p1 }
  0x63   :  { %1735 = shalt.err (!%p1732_p5)
}
  0x64   :  { %s1798_s2 = smov 64   ;;  %s1799_s28 = smov 4  }
  0x65   :  { %71 = dma.hbm_to_vmem [thread:$0]  %s2049_s4, 4096, %s1905_s11, [#allocation9], %s1798_s2, %s1798_s2, %s1799_s28  }
  0x66   :  { %s1800_s1 = smov [#allocation13]   ;;  %s1736_s13 = scalar_lea.hbm %s2051_s6, 2048 }
  0x67   :  { %s89_s27 = sshll.u32 %s1800_s1, 4  ;;  %p1737_p6 = scmp.ne.s32.totalorder %s2051_s6, %s1736_s13  ;;  %s90_s27 = int_to_ptr.vmem [resolvable:$true] %s89_s27 }
  0x68   :  { %p1740_p7 = scmp.lt.u32.totalorder %s1736_s13, %s2051_s6 }
  0x6a   :  { %p1742_p8 = pnand %p1740_p7, %p1737_p6 }
  0x6c   :  { %1745 = shalt.err (!%p1742_p8)
}
  0x6d   :  { %s1746_s18 = scalar_lea.vmem %s90_s27, 2048  ;;  %p1751_p10 = scmp.lt.s32.totalorder %s90_s27, %s90_s27 }
  0x6e   :  { %p1747_p9 = scmp.ne.s32.totalorder %s90_s27, %s1746_s18  ;;  %p1752_p11 = scmp.lt.s32.totalorder %s1746_s18, %s1746_s18 }
  0x70   :  { %p1753_p12 = por %p1752_p11, %p1751_p10 }
  0x72   :  { %p1754_p13 = pnand %p1753_p12, %p1747_p9 }
  0x74   :  { %1757 = shalt.err (!%p1754_p13)
}
  0x75   :  { %95 = dma.hbm_to_vmem [thread:$0]  %s2051_s6, 2048, %s90_s27, [#allocation12], %s1798_s2, %s1798_s2, %s1799_s28  }
  0x76   :  { %1780 = dma.done.wait [#allocation3], 128  }
  0x77   :  { %1781 = vsyncadd [#allocation3], 4294967168 }
  0x78   :  { %1782 = dma.done.wait [#allocation6], 256  }
  0x79   :  { %1783 = vsyncadd [#allocation6], 4294967040 }
  0x7a   :  { %1784 = dma.done.wait [#allocation9], 6144  }
  0x7b   :  { %1785 = vsyncadd [#allocation9], 4294961152 }
  0x7c   :  { %1786 = dma.done.wait [#allocation12], 6144  }
  0x7d   :  { %1787 = vsyncadd [#allocation12], 4294961152  ;;  %v1801_v0 = vmov 0   ;;  %v1802_v1 = vmov 0.0   ;;  %v1480_v2 = vld [vmem:[#allocation8 + $0x4] ss:$8 sps:$4 sm:$0xff]  }
  0x7e   :  { %254 = vmatprep.mubr.bf16.mxu0 %v1801_v0  ;;  %1385 = vmatprep.subr.bf16.mxu1 %v1802_v1  ;;  %v1482_v3 = vld [vmem:[#allocation8] ss:$8 sps:$4 sm:$0xff]   ;;  %v1483_v4 = vld [vmem:[#allocation8 + $0x14] ss:$8 sps:$4 sm:$0xff]   ;;  %v1485_v5 = vld [vmem:[#allocation8 + $0x10] ss:$8 sps:$4 sm:$0xff]  }
  0x7f   :  { %222 = vmatprep.subr.bf16.mxu0 %v1480_v2  ;;  %v1486_v6 = vld [vmem:[#allocation8 + $0x24] ss:$8 sps:$4 sm:$0xff]   ;;  %v1488_v7 = vld [vmem:[#allocation8 + $0x20] ss:$8 sps:$4 sm:$0xff]   ;;  %v1489_v8 = vld [vmem:[#allocation8 + $0x34] ss:$8 sps:$4 sm:$0xff]  }
  0x80   :  { %223 = vmatpush1.bf16.msra.mxu0 %v1482_v3  ;;  %v1491_v9 = vld [vmem:[#allocation8 + $0x30] ss:$8 sps:$4 sm:$0xff]   ;;  %v1504_v10 = vld [vmem:[#allocation10] sm:$0xff]   ;;  %v1505_v12 = vld [vmem:[#allocation10 + $0x8] sm:$0xff]   ;;  %vm1803_vm0 = vmmov 0   ;;  %s1804_s18 = smov [#allocation14]  }
  0x81   :  { %224 = vmatprep.subr.bf16.mxu0 %v1483_v4  ;;  %v1492_v11 = vld [vmem:[#allocation8 + $0x44] ss:$8 sps:$4 sm:$0xff]   ;;  %1386 = vmatpush3.bf16.msra.mxu1 %v1504_v10  ;;  %v1494_v13 = vld [vmem:[#allocation8 + $0x40] ss:$8 sps:$4 sm:$0xff]   ;;  %v1495_v14 = vld [vmem:[#allocation8 + $0x54] ss:$8 sps:$4 sm:$0xff]  }
  0x82   :  { %1387 = vmatprep.subr.bf16.mxu1 %v1802_v1  ;;  %v1506_v15 = vld [vmem:[#allocation10 + $0x10] sm:$0xff]   ;;  %v1498_v17 = vld [vmem:[#allocation8 + $0x64] ss:$8 sps:$4 sm:$0xff]   ;;  %v1507_v18 = vld [vmem:[#allocation10 + $0x18] sm:$0xff]   ;;  %1401 = vmatprep.mubr.msk.bf16.mxu1 %vm1803_vm0, %v1802_v1  ;;  %s1206_s4 = sshll.u32 %s1804_s18, 4  ;;  %s1207_s4 = int_to_ptr.vmem [resolvable:$true] %s1206_s4 }
  0x83   :  { %v1497_v16 = vld [vmem:[#allocation8 + $0x50] ss:$8 sps:$4 sm:$0xff]   ;;  %v1500_v19 = vld [vmem:[#allocation8 + $0x60] ss:$8 sps:$4 sm:$0xff]   ;;  %v1501_v20 = vld [vmem:[#allocation8 + $0x74] ss:$8 sps:$4 sm:$0xff]   ;;  %p1763_p1 = scmp.lt.s32.totalorder %s1207_s4, %s1207_s4 }
  0x84   :  { %225 = vmatpush1.bf16.msra.mxu0 %v1485_v5  ;;  %v1508_v21 = vld [vmem:[#allocation10 + $0x20] sm:$0xff]   ;;  %v1503_v22 = vld [vmem:[#allocation8 + $0x70] ss:$8 sps:$4 sm:$0xff]   ;;  %v120_v23 = vld [vmem:[#allocation2] sm:$0xff]  ;;  %s1758_s11 = scalar_lea.vmem %s1207_s4, 128 }
  0x85   :  { %226 = vmatprep.subr.bf16.mxu0 %v1486_v6  ;;  %1388 = vmatpush3.bf16.msra.mxu1 %v1505_v12  ;;  %v1509_v24 = vld [vmem:[#allocation10 + $0x28] sm:$0xff]   ;;  %v121_v25 = vpack.c.bf16 %v120_v23, %v120_v23  ;;  %v1510_v26 = vld [vmem:[#allocation10 + $0x30] sm:$0xff]   ;;  %v1511_v27 = vld [vmem:[#allocation10 + $0x38] sm:$0xff]   ;;  %p1759_p0 = scmp.ne.s32.totalorder %s1207_s4, %s1758_s11  ;;  %p1764_p2 = scmp.lt.s32.totalorder %s1758_s11, %s1758_s11 }
  0x86   :  { %1389 = vmatprep.subr.bf16.mxu1 %v1802_v1  ;;  %v1512_v28 = vld [vmem:[#allocation10 + $0x40] sm:$0xff]   ;;  %v1513_v29 = vld [vmem:[#allocation10 + $0x48] sm:$0xff]   ;;  %v1514_v30 = vld [vmem:[#allocation10 + $0x50] sm:$0xff]  }
  0x87   :  { %v1515_v31 = vld [vmem:[#allocation10 + $0x58] sm:$0xff]   ;;  %v1516_v32 = vld [vmem:[#allocation10 + $0x60] sm:$0xff]   ;;  %v1517_v33 = vld [vmem:[#allocation10 + $0x68] sm:$0xff]   ;;  %p1765_p3 = por %p1764_p2, %p1763_p1 }
  0x88   :  { %227 = vmatpush1.bf16.msra.mxu0 %v1488_v7  ;;  %v1235_v34 = vld [vmem:[%s2052_s7 + $0x1] ss:$0 sm:$0xff]  ;;  %v1518_v42 = vld [vmem:[#allocation10 + $0x70] sm:$0xff]   ;;  %v1236_v44 = vld [vmem:[%s2052_s7 + $0x2] ss:$0 sm:$0xff] }
  0x89   :  { %228 = vmatprep.subr.bf16.mxu0 %v1489_v8  ;;  %1390 = vmatpush3.bf16.msra.mxu1 %v1506_v15  ;;  %v1519_v43 = vld [vmem:[#allocation10 + $0x78] sm:$0xff]   ;;  %v1520_v52 = vld [vmem:[#allocation11] ss:$8 sps:$4 sm:$0xff]   ;;  %v1522_v53 = vld [vmem:[#allocation11 + $0x4] ss:$8 sps:$4 sm:$0xff]   ;;  %p1766_p4 = pnand %p1765_p3, %p1759_p0 }
  0x8a   :  { %1391 = vmatprep.subr.bf16.mxu1 %v1802_v1  ;;  %v1525_v54 = vld [vmem:[#allocation11 + $0x14] ss:$8 sps:$4 sm:$0xff]   ;;  %v1523_v55 = vld [vmem:[#allocation11 + $0x10] ss:$8 sps:$4 sm:$0xff]   ;;  %v1528_v56 = vld [vmem:[#allocation11 + $0x24] ss:$8 sps:$4 sm:$0xff]  }
  0x8b   :  { %v1526_v57 = vld [vmem:[#allocation11 + $0x20] ss:$8 sps:$4 sm:$0xff]   ;;  %v1531_v58 = vld [vmem:[#allocation11 + $0x34] ss:$8 sps:$4 sm:$0xff]   ;;  %v1529_v59 = vld [vmem:[#allocation11 + $0x30] ss:$8 sps:$4 sm:$0xff]  }
  0x8c   :  { %229 = vmatpush1.bf16.msra.mxu0 %v1491_v9  ;;  %v1534_v60 = vld [vmem:[#allocation11 + $0x44] ss:$8 sps:$4 sm:$0xff]   ;;  %v1532_v61 = vld [vmem:[#allocation11 + $0x40] ss:$8 sps:$4 sm:$0xff]   ;;  %v1537_v62 = vld [vmem:[#allocation11 + $0x54] ss:$8 sps:$4 sm:$0xff]  }
  0x8d   :  { %230 = vmatprep.subr.bf16.mxu0 %v1492_v11  ;;  %1392 = vmatpush3.bf16.msra.mxu1 %v1507_v18  ;;  %v1535_v63 = vld [vmem:[#allocation11 + $0x50] ss:$8 sps:$4 sm:$0xff]   ;;  %v1540_v0 = vld [vmem:[#allocation11 + $0x64] ss:$8 sps:$4 sm:$0xff]   ;;  %v1538_v2 = vld [vmem:[#allocation11 + $0x60] ss:$8 sps:$4 sm:$0xff]  }
  0x8e   :  { %1393 = vmatprep.subr.bf16.mxu1 %v1802_v1  ;;  %v1543_v3 = vld [vmem:[#allocation11 + $0x74] ss:$8 sps:$4 sm:$0xff]   ;;  %v1541_v4 = vld [vmem:[#allocation11 + $0x70] ss:$8 sps:$4 sm:$0xff]   ;;  %v1546_v5 = vld [vmem:[#allocation11 + $0x84] ss:$8 sps:$4 sm:$0xff]  }
  0x8f   :  { %v1544_v6 = vld [vmem:[#allocation11 + $0x80] ss:$8 sps:$4 sm:$0xff]   ;;  %v1234_v7 = vld [vmem:[%s2052_s7] ss:$0 sm:$0xff]  ;;  %v1245_v8 = vld [vmem:[%s2052_s7 + $0x3] ss:$0 sm:$0xff] }
  0x90   :  { %231 = vmatpush1.bf16.msra.mxu0 %v1494_v13  ;;  %v1555_v23 = vld [vmem:[#allocation11 + $0xb4] ss:$8 sps:$4 sm:$0xff]  }
  0x91   :  { %232 = vmatprep.subr.bf16.mxu0 %v1495_v14  ;;  %1394 = vmatpush3.bf16.msra.mxu1 %v1508_v21  ;;  %v1552_v21 = vld [vmem:[#allocation11 + $0xa4] ss:$8 sps:$4 sm:$0xff]  }
  0x92   :  { %1395 = vmatprep.subr.bf16.mxu1 %v1802_v1 }
  0x94   :  { %233 = vmatpush1.bf16.msra.mxu0 %v1497_v16 }
  0x95   :  { %234 = vmatprep.subr.bf16.mxu0 %v1498_v17  ;;  %1396 = vmatpush3.bf16.msra.mxu1 %v1509_v24  ;;  %v1553_v24 = vld [vmem:[#allocation11 + $0xb0] ss:$8 sps:$4 sm:$0xff]  }
  0x96   :  { %1397 = vmatprep.subr.bf16.mxu1 %v1802_v1 }
  0x98   :  { %235 = vmatpush1.bf16.msra.mxu0 %v1500_v19  ;;  %v1549_v19 = vld [vmem:[#allocation11 + $0x94] ss:$8 sps:$4 sm:$0xff]  }
  0x99   :  { %236 = vmatprep.subr.bf16.mxu0 %v1501_v20  ;;  %1398 = vmatpush3.bf16.msra.mxu1 %v1510_v26  ;;  %v1547_v20 = vld [vmem:[#allocation11 + $0x90] ss:$8 sps:$4 sm:$0xff]   ;;  %v1558_v26 = vld [vmem:[#allocation11 + $0xc4] ss:$8 sps:$4 sm:$0xff]  }
  0x9a   :  { %1399 = vmatprep.subr.bf16.mxu1 %v1802_v1 }
  0x9c   :  { %237 = vmatpush1.bf16.msra.mxu0 %v1503_v22  ;;  %v1550_v22 = vld [vmem:[#allocation11 + $0xa0] ss:$8 sps:$4 sm:$0xff]  }
  0x9d   :  { %1405 = vmatprep.subr.bf16.mxu0 %v1802_v1  ;;  %1400 = vmatpush3.bf16.msra.mxu1 %v1511_v27  ;;  %v1561_v27 = vld [vmem:[#allocation11 + $0xd4] ss:$8 sps:$4 sm:$0xff]  }
  0x9e   :  { %720 = vmatprep.subr.bf16.mxu1 %v1522_v53 }
  0x9f   :  { %255 = vmatmul.mubr.bf16.vlgmr.msra.gmra.mrb[0].mxu0 %v121_v25  ;;  %v1556_v25 = vld [vmem:[#allocation11 + $0xc0] ss:$8 sps:$4 sm:$0xff]  }
  0xa0   :  { %1421 = vmatprep.mubr.msk.bf16.mxu0 %vm1803_vm0, %v1802_v1  ;;  %1406 = vmatpush3.bf16.msra.mxu0 %v1512_v28  ;;  %v122_v28 = vld [vmem:[#allocation5] sm:$0xff] }
  0xa1   :  { %1407 = vmatprep.subr.bf16.mxu0 %v1802_v1 }
  0xa4   :  { %1408 = vmatpush3.bf16.msra.mxu0 %v1513_v29  ;;  %v123_v29 = vpack.c.bf16 %v122_v28, %v122_v28 }
  0xa5   :  { %1409 = vmatprep.subr.bf16.mxu0 %v1802_v1 }
  0xa8   :  { %1410 = vmatpush3.bf16.msra.mxu0 %v1514_v30  ;;  %v1559_v30 = vld [vmem:[#allocation11 + $0xd0] ss:$8 sps:$4 sm:$0xff]  }
  0xa9   :  { %1411 = vmatprep.subr.bf16.mxu0 %v1802_v1 }
  0xac   :  { %1412 = vmatpush3.bf16.msra.mxu0 %v1515_v31  ;;  %v1564_v31 = vld [vmem:[#allocation11 + $0xe4] ss:$8 sps:$4 sm:$0xff]  }
  0xad   :  { %1413 = vmatprep.subr.bf16.mxu0 %v1802_v1 }
  0xb0   :  { %1414 = vmatpush3.bf16.msra.mxu0 %v1516_v32  ;;  %v1562_v32 = vld [vmem:[#allocation11 + $0xe0] ss:$8 sps:$4 sm:$0xff]  }
  0xb1   :  { %1415 = vmatprep.subr.bf16.mxu0 %v1802_v1 }
  0xb4   :  { %1416 = vmatpush3.bf16.msra.mxu0 %v1517_v33  ;;  %v1567_v33 = vld [vmem:[#allocation11 + $0xf4] ss:$8 sps:$4 sm:$0xff]  }
  0xb5   :  { %1417 = vmatprep.subr.bf16.mxu0 %v1802_v1 }
  0xb8   :  { %1418 = vmatpush3.bf16.msra.mxu0 %v1518_v42 }
  0xb9   :  { %1419 = vmatprep.subr.bf16.mxu0 %v1802_v1 }
  0xbc   :  { %1420 = vmatpush3.bf16.msra.mxu0 %v1519_v43 }
  0xbd   :  { %1425 = vmatprep.subr.bf16.mxu0 %v1802_v1 }
 0x172   :  { %v256_v35 = vpop.f32.mrb[0].mxu0 }
 0x173   :  { %v258_v36 = vpop.f32.mrb[1].mxu0  ;;  %v268_v9 = vadd.f32 %v1234_v7, %v256_v35  ;;  %v1568_v35 = vld [vmem:[#allocation10 + $0x80] sm:$0xff]  }
 0x174   :  { %v275_v37 = vadd.f32 %v1235_v34, %v258_v36  ;;  %v260_v38 = vpop.f32.mrb[2].mxu0  ;;  %v1565_v34 = vld [vmem:[#allocation11 + $0xf0] ss:$8 sps:$4 sm:$0xff]   ;;  %v1569_v36 = vld [vmem:[#allocation10 + $0x88] sm:$0xff]   ;;  %v1580_v7 = vld [vmem:[#allocation10 + $0xe0] sm:$0xff]  }
 0x175   :  { %v261_v39 = vpop.f32.mrb[3].mxu0  ;;  %v269_v14 = vmax.f32 %v268_v9, 0.0  ;;  %v1571_v38 = vld [vmem:[#allocation10 + $0x98] sm:$0xff]   ;;  %v1582_v9 = vld [vmem:[#allocation10 + $0xf0] sm:$0xff]  }
 0x176   :  { %v276_v40 = vmax.f32 %v275_v37, 0.0  ;;  %v1570_v37 = vld [vmem:[#allocation10 + $0x90] sm:$0xff]   ;;  %v1572_v39 = vld [vmem:[#allocation10 + $0xa0] sm:$0xff]  }
 0x178   :  { %v277_v41 = vpack.c.bf16 %v276_v40, %v276_v40  ;;  %v1573_v40 = vld [vmem:[#allocation10 + $0xa8] sm:$0xff]  }
 0x17a   :  { %1402 = vmatmul.mubr.bf16.vlgmr.msra.gmra.mrb[0].mxu1 %v277_v41 }
 0x17b   :  { %721 = vmatpush1.bf16.msra.mxu1 %v1520_v52  ;;  %752 = vmatprep.mubr.bf16.mxu1 %v123_v29  ;;  %v1255_v52 = vld [vmem:[%s2052_s7 + $0x5] ss:$0 sm:$0xff] }
 0x17c   :  { %722 = vmatprep.subr.bf16.mxu1 %v1525_v54 }
 0x17f   :  { %723 = vmatpush1.bf16.msra.mxu1 %v1523_v55 }
 0x180   :  { %724 = vmatprep.subr.bf16.mxu1 %v1528_v56  ;;  %v1574_v56 = vld [vmem:[#allocation10 + $0xb0] sm:$0xff]  }
 0x183   :  { %725 = vmatpush1.bf16.msra.mxu1 %v1526_v57  ;;  %v1575_v57 = vld [vmem:[#allocation10 + $0xb8] sm:$0xff]  }
 0x184   :  { %726 = vmatprep.subr.bf16.mxu1 %v1531_v58  ;;  %v1289_v58 = vld [vmem:[%s2052_s7 + $0x7] ss:$0 sm:$0xff] }
 0x187   :  { %727 = vmatpush1.bf16.msra.mxu1 %v1529_v59 }
 0x188   :  { %728 = vmatprep.subr.bf16.mxu1 %v1534_v60 }
 0x18b   :  { %729 = vmatpush1.bf16.msra.mxu1 %v1532_v61 }
 0x18c   :  { %730 = vmatprep.subr.bf16.mxu1 %v1537_v62 }
 0x18f   :  { %731 = vmatpush1.bf16.msra.mxu1 %v1535_v63 }
 0x190   :  { %732 = vmatprep.subr.bf16.mxu1 %v1540_v0 }
 0x193   :  { %733 = vmatpush1.bf16.msra.mxu1 %v1538_v2  ;;  %v1576_v2 = vld [vmem:[#allocation10 + $0xc0] sm:$0xff]  }
 0x194   :  { %734 = vmatprep.subr.bf16.mxu1 %v1543_v3 }
 0x197   :  { %735 = vmatpush1.bf16.msra.mxu1 %v1541_v4  ;;  %v1577_v4 = vld [vmem:[#allocation10 + $0xc8] sm:$0xff]  }
 0x198   :  { %736 = vmatprep.subr.bf16.mxu1 %v1546_v5  ;;  %v1578_v5 = vld [vmem:[#allocation10 + $0xd0] sm:$0xff]  }
 0x19b   :  { %737 = vmatpush1.bf16.msra.mxu1 %v1544_v6  ;;  %v1579_v6 = vld [vmem:[#allocation10 + $0xd8] sm:$0xff]  }
 0x19c   :  { %738 = vmatprep.subr.bf16.mxu1 %v1549_v19  ;;  %v1584_v19 = vld [vmem:[#allocation13 + $0x40] sm:$0xff]  }
 0x19f   :  { %739 = vmatpush1.bf16.msra.mxu1 %v1547_v20  ;;  %v1585_v20 = vld [vmem:[#allocation13] sm:$0xff]  }
 0x1a0   :  { %740 = vmatprep.subr.bf16.mxu1 %v1552_v21  ;;  %v1299_v21 = vld [vmem:[%s2052_s7 + $0x9] ss:$0 sm:$0xff] }
 0x1a3   :  { %741 = vmatpush1.bf16.msra.mxu1 %v1550_v22 }
 0x1a4   :  { %742 = vmatprep.subr.bf16.mxu1 %v1555_v23 }
 0x1a7   :  { %743 = vmatpush1.bf16.msra.mxu1 %v1553_v24 }
 0x1a8   :  { %744 = vmatprep.subr.bf16.mxu1 %v1558_v26 }
 0x1ab   :  { %745 = vmatpush1.bf16.msra.mxu1 %v1556_v25 }
 0x1ac   :  { %746 = vmatprep.subr.bf16.mxu1 %v1561_v27 }
 0x1af   :  { %747 = vmatpush1.bf16.msra.mxu1 %v1559_v30 }
 0x1b0   :  { %748 = vmatprep.subr.bf16.mxu1 %v1564_v31 }
 0x1b3   :  { %749 = vmatpush1.bf16.msra.mxu1 %v1562_v32  ;;  %v1586_v32 = vld [vmem:[#allocation13 + $0x48] sm:$0xff]  }
 0x1b4   :  { %750 = vmatprep.subr.bf16.mxu1 %v1567_v33  ;;  %v1587_v33 = vld [vmem:[#allocation13 + $0x8] sm:$0xff]  }
 0x1b7   :  { %751 = vmatpush1.bf16.msra.mxu1 %v1565_v34  ;;  %v1588_v34 = vld [vmem:[#allocation13 + $0x50] sm:$0xff]  }
 0x1b8   :  { %1363 = vmatprep.subr.bf16.mxu1 %v1584_v19 }
 0x24d   :  { %v381_v45 = vpop.f32.mrb[0].mxu1 }
 0x24e   :  { %v382_v46 = vadd.f32 %v1236_v44, %v381_v45  ;;  %v1403_v47 = vpop.f32.mrb[1].mxu1 }
 0x24f   :  { %v384_v48 = vpop.f32.mrb[2].mxu1 }
 0x250   :  { %v387_v49 = vmax.f32 %v382_v46, 0.0  ;;  %v1404_v50 = vpop.f32.mrb[3].mxu1 }
 0x251   :  { %v1254_v50 = vld [vmem:[%s2052_s7 + $0x4] ss:$0 sm:$0xff] }
 0x252   :  { %v388_v51 = vpack.c.bf16 %v387_v49, %v387_v49 }
 0x254   :  { %1422 = vmatmul.mubr.bf16.vlgmr.msra.gmra.mrb[4].mxu0 %v388_v51 }
 0x255   :  { %1441 = vmatprep.mubr.msk.bf16.mxu0 %vm1803_vm0, %v1802_v1  ;;  %1426 = vmatpush3.bf16.msra.mxu0 %v1568_v35  ;;  %v1589_v35 = vld [vmem:[#allocation13 + $0x10] sm:$0xff]  }
 0x256   :  { %1427 = vmatprep.subr.bf16.mxu0 %v1802_v1 }
 0x259   :  { %1428 = vmatpush3.bf16.msra.mxu0 %v1569_v36  ;;  %v1590_v36 = vld [vmem:[#allocation13 + $0x58] sm:$0xff]  }
 0x25a   :  { %1429 = vmatprep.subr.bf16.mxu0 %v1802_v1 }
 0x25d   :  { %1430 = vmatpush3.bf16.msra.mxu0 %v1570_v37  ;;  %v1591_v37 = vld [vmem:[#allocation13 + $0x18] sm:$0xff]  }
 0x25e   :  { %1431 = vmatprep.subr.bf16.mxu0 %v1802_v1 }
 0x261   :  { %1432 = vmatpush3.bf16.msra.mxu0 %v1571_v38  ;;  %v1592_v38 = vld [vmem:[#allocation13 + $0x60] sm:$0xff]  }
 0x262   :  { %1433 = vmatprep.subr.bf16.mxu0 %v1802_v1 }
 0x265   :  { %1434 = vmatpush3.bf16.msra.mxu0 %v1572_v39  ;;  %v1593_v39 = vld [vmem:[#allocation13 + $0x20] sm:$0xff]  }
 0x266   :  { %1435 = vmatprep.subr.bf16.mxu0 %v1802_v1 }
 0x269   :  { %1436 = vmatpush3.bf16.msra.mxu0 %v1573_v40  ;;  %v1594_v40 = vld [vmem:[#allocation13 + $0x68] sm:$0xff]  }
 0x26a   :  { %1437 = vmatprep.subr.bf16.mxu0 %v1802_v1 }
 0x26d   :  { %1438 = vmatpush3.bf16.msra.mxu0 %v1574_v56 }
 0x26e   :  { %1439 = vmatprep.subr.bf16.mxu0 %v1802_v1 }
 0x271   :  { %1440 = vmatpush3.bf16.msra.mxu0 %v1575_v57  ;;  %v1308_v57 = vld [vmem:[%s2052_s7 + $0xa] ss:$0 sm:$0xff] }
 0x272   :  { %1445 = vmatprep.subr.bf16.mxu0 %v1802_v1 }
 0x327   :  { %v493_v10 = vpop.f32.mrb[4].mxu0 }
 0x328   :  { %v494_v11 = vadd.f32 %v1245_v8, %v493_v10  ;;  %v1423_v12 = vpop.f32.mrb[5].mxu0  ;;  %v1581_v8 = vld [vmem:[#allocation10 + $0xe8] sm:$0xff]   ;;  %v1583_v10 = vld [vmem:[#allocation10 + $0xf8] sm:$0xff]  }
 0x329   :  { %v496_v13 = vpop.f32.mrb[6].mxu0 }
 0x32a   :  { %v499_v15 = vmax.f32 %v494_v11, 0.0  ;;  %v1424_v16 = vpop.f32.mrb[7].mxu0  ;;  %v1290_v11 = vld [vmem:[%s2052_s7 + $0x8] ss:$0 sm:$0xff] }
 0x32c   :  { %v1983_v17 = vadd.f32 %v499_v15, %v269_v14 }
 0x32e   :  { %503 = vadd.xlane.f32.xlu0 %v1983_v17  ;;  %v507_v18 = vmul.f32 %v1983_v17, %v1983_v17 }
 0x332   :  { %508 = vadd.xlane.f32.xlu0 %v507_v18 }
 0x3bb   :  { %v504_v41 = vpop.xlane.xlu0 %503 }
 0x3bc   :  { %v506_v42 = vmul.f32 0.0078125, %v504_v41  ;;  %v124_v41 = vld [vmem:[#allocation7] sm:$0xff] }
 0x3be   :  { %v511_v44 = vmul.f32 %v506_v42, %v506_v42  ;;  %v513_v48 = vsub.f32 %v1983_v17, %v506_v42  ;;  %v125_v42 = vpack.c.bf16 %v124_v41, %v124_v41 }
 0x3bf   :  { %v509_v43 = vpop.xlane.xlu0 %508 }
 0x3c0   :  { %v510_v45 = vmul.f32 0.0078125, %v509_v43  ;;  %v1595_v43 = vld [vmem:[#allocation13 + $0x28] sm:$0xff]  }
 0x3c2   :  { %v512_v46 = vsub.f32 %v510_v45, %v511_v44  ;;  %v1596_v44 = vld [vmem:[#allocation13 + $0x70] sm:$0xff]  }
 0x3c3   :  { %v1597_v45 = vld [vmem:[#allocation13 + $0x30] sm:$0xff]  }
 0x3c4   :  { %v514_v47 = vadd.f32 1e-05, %v512_v46  ;;  %v1598_v46 = vld [vmem:[#allocation13 + $0x78] sm:$0xff]  }
 0x3c6   :  { %1600 = vrsqrt.f32 %v514_v47  ;;  %v1599_v47 = vld [vmem:[#allocation13 + $0x38] sm:$0xff]  }
 0x3d0   :  { %v1601_v49 = vpop.eup %1600 }
 0x3d1   :  { %v516_v51 = vmul.f32 %v1601_v49, %v513_v48 }
 0x3d3   :  { %v521_v53 = vmul.f32 %v1254_v50, %v516_v51 }
 0x3d5   :  { %v526_v54 = vadd.f32 %v1255_v52, %v521_v53 }
 0x3d7   :  { %v527_v55 = vpack.c.bf16 %v526_v54, %v526_v54 }
 0x3d9   :  { %753 = vmatmul.mubr.bf16.vlgmr.msra.gmra.mrb[4].mxu1 %v527_v55 }
 0x3da   :  { %1364 = vmatpush3.bf16.msra.mxu1 %v1585_v20  ;;  %1191 = vmatprep.mubr.bf16.mxu1 %v125_v42 }
 0x3db   :  { %1365 = vmatprep.subr.bf16.mxu1 %v1586_v32 }
 0x3de   :  { %1366 = vmatpush3.bf16.msra.mxu1 %v1587_v33 }
 0x3df   :  { %1367 = vmatprep.subr.bf16.mxu1 %v1588_v34 }
 0x3e2   :  { %1368 = vmatpush3.bf16.msra.mxu1 %v1589_v35 }
 0x3e3   :  { %1369 = vmatprep.subr.bf16.mxu1 %v1590_v36 }
 0x3e6   :  { %1370 = vmatpush3.bf16.msra.mxu1 %v1591_v37 }
 0x3e7   :  { %1371 = vmatprep.subr.bf16.mxu1 %v1592_v38 }
 0x3ea   :  { %1372 = vmatpush3.bf16.msra.mxu1 %v1593_v39 }
 0x3eb   :  { %1373 = vmatprep.subr.bf16.mxu1 %v1594_v40 }
 0x3ee   :  { %1374 = vmatpush3.bf16.msra.mxu1 %v1595_v43 }
 0x3ef   :  { %1375 = vmatprep.subr.bf16.mxu1 %v1596_v44 }
 0x3f2   :  { %1376 = vmatpush3.bf16.msra.mxu1 %v1597_v45 }
 0x3f3   :  { %1377 = vmatprep.subr.bf16.mxu1 %v1598_v46 }
 0x3f6   :  { %1378 = vmatpush3.bf16.msra.mxu1 %v1599_v47 }
 0x4ac   :  { %v754_v59 = vpop.f32.mrb[4].mxu1 }
 0x4ad   :  { %v756_v60 = vpop.f32.mrb[5].mxu1 }
 0x4ae   :  { %v773_v61 = vadd.f32 %v1289_v58, %v756_v60  ;;  %v758_v62 = vpop.f32.mrb[6].mxu1 }
 0x4af   :  { %v759_v63 = vpop.f32.mrb[7].mxu1 }
 0x4b0   :  { %v774_v0 = vmax.f32 %v773_v61, 0.0 }
 0x4b2   :  { %v775_v3 = vpack.c.bf16 %v774_v0, %v774_v0  ;;  %v1310_v0 = vld [vmem:[%s2052_s7 + $0xc] ss:$0 sm:$0xff] }
 0x4b4   :  { %1442 = vmatmul.mubr.bf16.vlgmr.msra.gmra.mrb[8].mxu0 %v775_v3 }
 0x4b5   :  { %1446 = vmatpush3.bf16.msra.mxu0 %v1576_v2  ;;  %1461 = vmatprep.mubr.msk.bf16.mxu0 %vm1803_vm0, %v1802_v1 }
 0x4b6   :  { %1447 = vmatprep.subr.bf16.mxu0 %v1802_v1 }
 0x4b9   :  { %1448 = vmatpush3.bf16.msra.mxu0 %v1577_v4 }
 0x4ba   :  { %1449 = vmatprep.subr.bf16.mxu0 %v1802_v1 }
 0x4bd   :  { %1450 = vmatpush3.bf16.msra.mxu0 %v1578_v5 }
 0x4be   :  { %1451 = vmatprep.subr.bf16.mxu0 %v1802_v1 }
 0x4c1   :  { %1452 = vmatpush3.bf16.msra.mxu0 %v1579_v6 }
 0x4c2   :  { %1453 = vmatprep.subr.bf16.mxu0 %v1802_v1 }
 0x4c5   :  { %1454 = vmatpush3.bf16.msra.mxu0 %v1580_v7 }
 0x4c6   :  { %1455 = vmatprep.subr.bf16.mxu0 %v1802_v1 }
 0x4c9   :  { %1456 = vmatpush3.bf16.msra.mxu0 %v1581_v8 }
 0x4ca   :  { %1457 = vmatprep.subr.bf16.mxu0 %v1802_v1 }
 0x4cd   :  { %1458 = vmatpush3.bf16.msra.mxu0 %v1582_v9 }
 0x4ce   :  { %1459 = vmatprep.subr.bf16.mxu0 %v1802_v1  ;;  %v1288_v1 = vld [vmem:[%s2052_s7 + $0x6] ss:$0 sm:$0xff] }
 0x4cf   :  { %v766_v22 = vadd.f32 %v1288_v1, %v754_v59  ;;  %v1309_v59 = vld [vmem:[%s2052_s7 + $0xb] ss:$0 sm:$0xff] }
 0x4d1   :  { %1460 = vmatpush3.bf16.msra.mxu0 %v1583_v10  ;;  %v767_v27 = vmax.f32 %v766_v22, 0.0 }
 0x587   :  { %v880_v12 = vpop.f32.mrb[8].mxu0 }
 0x588   :  { %v881_v13 = vadd.f32 %v1290_v11, %v880_v12  ;;  %v1443_v14 = vpop.f32.mrb[9].mxu0 }
 0x589   :  { %v883_v15 = vpop.f32.mrb[10].mxu0 }
 0x58a   :  { %v886_v16 = vmax.f32 %v881_v13, 0.0  ;;  %v1444_v17 = vpop.f32.mrb[11].mxu0 }
 0x58c   :  { %v887_v18 = vpack.c.bf16 %v886_v16, %v886_v16 }
 0x58e   :  { %1462 = vmatmul.mubr.bf16.vlgmr.msra.gmra.mrb[12].mxu0 %v887_v18 }
 0x661   :  { %v992_v23 = vpop.f32.mrb[12].mxu0 }
 0x662   :  { %v993_v24 = vadd.f32 %v1299_v21, %v992_v23  ;;  %v1463_v25 = vpop.f32.mrb[13].mxu0 }
 0x663   :  { %v995_v26 = vpop.f32.mrb[14].mxu0 }
 0x664   :  { %v998_v28 = vmax.f32 %v993_v24, 0.0  ;;  %v1464_v29 = vpop.f32.mrb[15].mxu0 }
 0x666   :  { %v999_v30 = vadd.f32 %v998_v28, %v767_v27 }
 0x668   :  { %1002 = vadd.xlane.f32.xlu1 %v999_v30  ;;  %v1005_v31 = vmul.f32 %v999_v30, %v999_v30 }
 0x66c   :  { %1006 = vadd.xlane.f32.xlu1 %v1005_v31 }
 0x6f5   :  { %v1003_v48 = vpop.xlane.xlu1 %1002 }
 0x6f6   :  { %v1004_v49 = vmul.f32 0.0078125, %v1003_v48 }
 0x6f8   :  { %v1009_v51 = vmul.f32 %v1004_v49, %v1004_v49  ;;  %v1011_v55 = vsub.f32 %v999_v30, %v1004_v49 }
 0x6f9   :  { %v1007_v50 = vpop.xlane.xlu1 %1006 }
 0x6fa   :  { %v1008_v52 = vmul.f32 0.0078125, %v1007_v50 }
 0x6fc   :  { %v1010_v53 = vsub.f32 %v1008_v52, %v1009_v51 }
 0x6fe   :  { %v1012_v54 = vadd.f32 1e-05, %v1010_v53 }
 0x700   :  { %1602 = vrsqrt.f32 %v1012_v54 }
 0x70a   :  { %v1603_v56 = vpop.eup %1602 }
 0x70b   :  { %v1014_v58 = vmul.f32 %v1603_v56, %v1011_v55 }
 0x70d   :  { %v1019_v60 = vmul.f32 %v1308_v57, %v1014_v58 }
 0x70f   :  { %v1024_v61 = vadd.f32 %v1309_v59, %v1019_v60 }
 0x711   :  { %v1025_v62 = vpack.c.bf16 %v1024_v61, %v1024_v61 }
 0x713   :  { %1192 = vmatmul.mubr.bf16.vlgmr.msra.gmra.mrb[8].mxu1 %v1025_v62 }
 0x7e6   :  { %v1379_v63 = vpop.f32.mrb[8].mxu1 }
 0x7e7   :  { %v1380_v2 = vpop.f32.mrb[9].mxu1 }
 0x7e8   :  { %v1381_v3 = vadd.f32 %v1380_v2, %v1379_v63  ;;  %v1382_v4 = vpop.f32.mrb[10].mxu1 }
 0x7e9   :  { %v1383_v5 = vpop.f32.mrb[11].mxu1 }
 0x7ea   :  { %v1194_v6 = vadd.f32 %v1381_v3, %v1310_v0 }
 0x7ec   :  { %1199 = vst [vmem:[#allocation14] sm:$0xff] %v1194_v6 }
 0x7ed   :  { %1769 = shalt.err (!%p1766_p4)
}
 0x7ee   :  { %s1770_s7 = scalar_lea.hbm %s2053_s8, 128 }
 0x7ef   :  { %p1771_p5 = scmp.ne.s32.totalorder %s2053_s8, %s1770_s7  ;;  %p1774_p6 = scmp.lt.u32.totalorder %s1770_s7, %s2053_s8 }
 0x7f1   :  { %p1776_p7 = pnand %p1774_p6, %p1771_p5 }
 0x7f3   :  { %1779 = shalt.err (!%p1776_p7)
}
 0x7f4   :  { %1209 = dma.vmem_to_hbm [thread:$0]  %s1207_s4, 128, %s2053_s8, [#allocation4]  }
 0x7f5   :  { %1788 = dma.done.wait [#allocation4], 128  }
 0x7f6   :  { %1789 = vsyncadd [#allocation4], 4294967168 }
 0x7f7   :  { %1213 = vsyncpa [#allocation3], 1 }
 0x7f8   :  { %1214 = vsyncpa [#allocation6], 1 }
 0x7f9   :  { %1215 = vsyncpa [#allocation9], 1 }
 0x7fa   :  { %1216 = vsyncpa [#allocation12], 1 }
 0x7fb   :  { %1217 = vsyncpa [#allocation4], 1 }

</bundles_post_ra>
